<compile_context>
chip_gen: v7x
topology: tpu7x:2x2x1
jax: 0.10.0
libtpu: 0.0.40
codegen_flags: <defaults>
</compile_context>

<pallas_src>
import functools

import jax
import jax.numpy as jnp
from jax.experimental import pallas as pl
from jax.experimental.pallas import tpu as pltpu


def _round_up(x, m):
    return (x + m - 1) // m * m


def qnet_kernel(x_ref, w1_ref, b1_ref, w2_ref, b2_ref, w3_ref, b3_ref, o_ref):
    # in-kernel f32 -> bf16 cast of the input (VPU has slack next to the MXU)
    x = x_ref[...].astype(jnp.bfloat16)
    # fc1 + relu1: bf16 operands, f32 accumulate, f32 bias/ReLU
    h1 = jnp.dot(x, w1_ref[...], preferred_element_type=jnp.float32)
    h1 = jnp.maximum(h1 + b1_ref[...], 0.0).astype(w2_ref.dtype)
    # fc2 + relu2
    h2 = jnp.dot(h1, w2_ref[...], preferred_element_type=jnp.float32)
    h2 = jnp.maximum(h2 + b2_ref[...], 0.0)
    # fc3 (Q-value head) kept fully in f32; output columns lane-padded to 128
    out = jnp.dot(h2, w3_ref[...], preferred_element_type=jnp.float32) + b3_ref[...]
    o_ref[...] = out.astype(o_ref.dtype)


def _pick_tile(B, S, n3_pad, tile_b):
    """Adaptive batch tile: multiple of 128, fits VMEM budget, >=2 grid steps."""
    H1, H2 = 256, 128
    tile_b = max(128, min(tile_b, _round_up(max(B, 1), 128)))
    tile_b = _round_up(tile_b, 128)

    # Rough VMEM usage of one pipelined step (f32 x/out double-buffered,
    # f32+bf16 intermediates).  Budget leaves headroom inside v7x's 64 MiB.
    budget = 40 * 1024 * 1024

    def vmem_bytes(tb):
        x_blk = 2 * tb * S * 4
        o_blk = 2 * tb * n3_pad * 4
        inter = tb * (H1 * 4 + H1 * 2 + H2 * 4)
        return x_blk + o_blk + inter

    while tile_b > 128 and vmem_bytes(tile_b) > budget:
        tile_b = max(128, (tile_b // 2) // 128 * 128)

    b_pad = _round_up(max(B, 1), tile_b)
    # v7x megacore: make sure both TensorCores get work when the batch allows.
    while tile_b > 128 and b_pad // tile_b < 2:
        tile_b = max(128, (tile_b // 2) // 128 * 128)
        b_pad = _round_up(max(B, 1), tile_b)
    return tile_b, b_pad


@functools.partial(jax.jit, static_argnames=("tile_b",))
def qnetwork_forward(x, params, *, tile_b=2048):
    """x: [B, state_size] float32; params: dict of (W[in,out], b[1,out]) float32."""
    w1, b1 = params["w1"], params["b1"]
    w2, b2 = params["w2"], params["b2"]
    w3, b3 = params["w3"], params["b3"]

    B, S = x.shape
    H1 = w1.shape[1]            # 256
    H2 = w2.shape[1]            # 128
    action_size = w3.shape[1]

    # Lane-dense output width (keep >= 128; do not shrink below 128 lanes).
    N3_pad = _round_up(action_size, 128)
    tile_b, B_pad = _pick_tile(B, S, N3_pad, tile_b)

    # x stays f32 and unpadded along S; pad batch rows only if needed.
    x_p = x if B_pad == B else jnp.pad(x, ((0, B_pad - B), (0, 0)))

    bf16 = jnp.bfloat16
    w1_c = w1.astype(bf16)                         # (S, 256)
    w2_c = w2.astype(bf16)                         # (256, 128)
    w3_p = jnp.zeros((H2, N3_pad), jnp.float32).at[:, :action_size].set(w3)
    b3_p = jnp.zeros((1, N3_pad), jnp.float32).at[:, :action_size].set(b3)

    grid = (B_pad // tile_b,)

    # Batch-tiled specs for x / out; constant-indexed (VMEM-resident) weights.
    x_spec = pl.BlockSpec((tile_b, S), lambda i: (i, 0))
    o_spec = pl.BlockSpec((tile_b, N3_pad), lambda i: (i, 0))
    const = lambda a: pl.BlockSpec(a.shape, lambda i: tuple(0 for _ in a.shape))

    out_padded = pl.pallas_call(
        qnet_kernel,
        out_shape=jax.ShapeDtypeStruct((B_pad, N3_pad), jnp.float32),
        grid=grid,
        in_specs=[
            x_spec,
            const(w1_c), const(b1),
            const(w2_c), const(b2),
            const(w3_p), const(b3_p),
        ],
        out_specs=o_spec,
        compiler_params=pltpu.CompilerParams(
            dimension_semantics=("parallel",),       # shards batch tiles across TCs (v7x)
            vmem_limit_bytes=48 * 1024 * 1024,       # < v7x 64 MiB physical, ample on v5e/v6e
        ),
    )(x_p, w1_c, b1, w2_c, b2, w3_p, b3_p)

    return out_padded[:B, :action_size]


def init_params(key, state_size, action_size):
    """Deterministic init mirroring nn.Linear's U(-1/sqrt(fan_in), 1/sqrt(fan_in))."""
    def linear(k, fan_in, fan_out):
        k_w, k_b = jax.random.split(k)
        bound = 1.0 / jnp.sqrt(fan_in)
        # stored already transposed: [in, out]
        w = jax.random.uniform(k_w, (fan_in, fan_out), jnp.float32, -bound, bound)
        b = jax.random.uniform(k_b, (1, fan_out), jnp.float32, -bound, bound)
        return w, b

    k1, k2, k3 = jax.random.split(key, 3)
    w1, b1 = linear(k1, state_size, 256)
    w2, b2 = linear(k2, 256, 128)
    w3, b3 = linear(k3, 128, action_size)
    return {"w1": w1, "b1": b1, "w2": w2, "b2": b2, "w3": w3, "b3": b3}


def reference_forward_f32(x, p):
    h1 = jnp.maximum(x @ p["w1"] + p["b1"], 0.0)
    h2 = jnp.maximum(h1 @ p["w2"] + p["b2"], 0.0)
    return h2 @ p["w3"] + p["b3"]


def reference_forward_kernel_numerics(x, p):
    """Matches the kernel's bf16 fc1/fc2 + f32 fc3 numerics."""
    bf = jnp.bfloat16
    h1 = jnp.dot(x.astype(bf), p["w1"].astype(bf), preferred_element_type=jnp.float32)
    h1 = jnp.maximum(h1 + p["b1"], 0.0).astype(bf)
    h2 = jnp.dot(h1, p["w2"].astype(bf), preferred_element_type=jnp.float32)
    h2 = jnp.maximum(h2 + p["b2"], 0.0)
    return jnp.dot(h2, p["w3"], preferred_element_type=jnp.float32) + p["b3"]


if __name__ == "__main__":
    batch, state_size, action_size = 2, 8, 4
    key = jax.random.PRNGKey(0)
    k_params, k_x = jax.random.split(key)

    params = init_params(k_params, state_size, action_size)
    x = jax.random.normal(k_x, (batch, state_size), jnp.float32)

    out = jax.block_until_ready(qnetwork_forward(x, params))
    ref_knl = jax.block_until_ready(reference_forward_kernel_numerics(x, params))
    ref_f32 = jax.block_until_ready(reference_forward_f32(x, params))

    assert out.shape == (batch, action_size)
    # kernel math matches a reference with identical mixed-precision recipe ...
    assert jnp.allclose(out, ref_knl, atol=2e-3, rtol=2e-3)
    # ... and the full-f32 reference within bf16-induced error of fc1/fc2.
    assert jnp.allclose(out, ref_f32, atol=5e-2, rtol=5e-2)
    print("KERNEL_OK")
</pallas_src>

<mosaic_0001>
module attributes {stable_mosaic.version = 11 : i64} {
  func.func @qnet_kernel(%arg0: i32, %arg1: memref<128x8xf32, #tpu.memory_space<vmem>>, %arg2: memref<8x256xbf16, #tpu.memory_space<vmem>>, %arg3: memref<1x256xf32, #tpu.memory_space<vmem>>, %arg4: memref<256x128xbf16, #tpu.memory_space<vmem>>, %arg5: memref<1x128xf32, #tpu.memory_space<vmem>>, %arg6: memref<128x128xf32, #tpu.memory_space<vmem>>, %arg7: memref<1x128xf32, #tpu.memory_space<vmem>>, %arg8: memref<128x128xf32, #tpu.memory_space<vmem>>) attributes {dimension_semantics = [#tpu.dimension_semantics<parallel>], iteration_bounds = array<i64: 1>, scalar_prefetch = 0 : i64, scratch_operands = 0 : i64, tpu.core_type = #tpu.core_type<tc>, window_params = [{transform_indices = @transform_0, window_bounds = array<i64: 128, 8>}, {pipeline_mode = #tpu.pipeline_mode<synchronous>, transform_indices = @transform_1, window_bounds = array<i64: 8, 256>}, {pipeline_mode = #tpu.pipeline_mode<synchronous>, transform_indices = @transform_2, window_bounds = array<i64: 1, 256>}, {pipeline_mode = #tpu.pipeline_mode<synchronous>, transform_indices = @transform_3, window_bounds = array<i64: 256, 128>}, {pipeline_mode = #tpu.pipeline_mode<synchronous>, transform_indices = @transform_4, window_bounds = array<i64: 1, 128>}, {pipeline_mode = #tpu.pipeline_mode<synchronous>, transform_indices = @transform_5, window_bounds = array<i64: 128, 128>}, {pipeline_mode = #tpu.pipeline_mode<synchronous>, transform_indices = @transform_6, window_bounds = array<i64: 1, 128>}, {transform_indices = @transform_7, window_bounds = array<i64: 128, 128>}]} {
    %c0 = arith.constant 0 : index
    %c0_0 = arith.constant 0 : index
    %0 = vector.load %arg1[%c0, %c0_0] : memref<128x8xf32, #tpu.memory_space<vmem>>, vector<128x8xf32>
    %1 = arith.truncf %0 : vector<128x8xf32> to vector<128x8xbf16>
    %c0_1 = arith.constant 0 : index
    %c0_2 = arith.constant 0 : index
    %2 = vector.load %arg2[%c0_1, %c0_2] : memref<8x256xbf16, #tpu.memory_space<vmem>>, vector<8x256xbf16>
    %cst = arith.constant dense<0.000000e+00> : vector<128x256xf32>
    %3 = tpu.matmul %1, %2, %cst {dimension_numbers = #tpu.dot_dimension_numbers<[1], [0], [0], [1], [0, 0, 1, 1], [], []>} : vector<128x8xbf16>, vector<8x256xbf16>, vector<128x256xf32> -> vector<128x256xf32>
    %c0_3 = arith.constant 0 : index
    %c0_4 = arith.constant 0 : index
    %4 = vector.load %arg3[%c0_3, %c0_4] : memref<1x256xf32, #tpu.memory_space<vmem>>, vector<1x256xf32>
    %5 = vector.broadcast %4 : vector<1x256xf32> to vector<128x256xf32>
    %6 = arith.addf %3, %5 : vector<128x256xf32>
    %cst_5 = arith.constant 0.000000e+00 : f32
    %7 = vector.broadcast %cst_5 : f32 to vector<128x256xf32>
    %8 = arith.maximumf %6, %7 : vector<128x256xf32>
    %9 = arith.truncf %8 : vector<128x256xf32> to vector<128x256xbf16>
    %c0_6 = arith.constant 0 : index
    %c0_7 = arith.constant 0 : index
    %10 = vector.load %arg4[%c0_6, %c0_7] : memref<256x128xbf16, #tpu.memory_space<vmem>>, vector<256x128xbf16>
    %cst_8 = arith.constant dense<0.000000e+00> : vector<128x128xf32>
    %11 = tpu.matmul %9, %10, %cst_8 {dimension_numbers = #tpu.dot_dimension_numbers<[1], [0], [0], [1], [0, 0, 1, 1], [], []>} : vector<128x256xbf16>, vector<256x128xbf16>, vector<128x128xf32> -> vector<128x128xf32>
    %c0_9 = arith.constant 0 : index
    %c0_10 = arith.constant 0 : index
    %12 = vector.load %arg5[%c0_9, %c0_10] : memref<1x128xf32, #tpu.memory_space<vmem>>, vector<1x128xf32>
    %13 = vector.broadcast %12 : vector<1x128xf32> to vector<128x128xf32>
    %14 = arith.addf %11, %13 : vector<128x128xf32>
    %cst_11 = arith.constant 0.000000e+00 : f32
    %15 = vector.broadcast %cst_11 : f32 to vector<128x128xf32>
    %16 = arith.maximumf %14, %15 : vector<128x128xf32>
    %c0_12 = arith.constant 0 : index
    %c0_13 = arith.constant 0 : index
    %17 = vector.load %arg6[%c0_12, %c0_13] : memref<128x128xf32, #tpu.memory_space<vmem>>, vector<128x128xf32>
    %cst_14 = arith.constant dense<0.000000e+00> : vector<128x128xf32>
    %18 = tpu.matmul %16, %17, %cst_14 {dimension_numbers = #tpu.dot_dimension_numbers<[1], [0], [0], [1], [0, 0, 1, 1], [], []>} : vector<128x128xf32>, vector<128x128xf32>, vector<128x128xf32> -> vector<128x128xf32>
    %c0_15 = arith.constant 0 : index
    %c0_16 = arith.constant 0 : index
    %19 = vector.load %arg7[%c0_15, %c0_16] : memref<1x128xf32, #tpu.memory_space<vmem>>, vector<1x128xf32>
    %20 = vector.broadcast %19 : vector<1x128xf32> to vector<128x128xf32>
    %21 = arith.addf %18, %20 : vector<128x128xf32>
    %c0_17 = arith.constant 0 : index
    %c0_18 = arith.constant 0 : index
    %22 = vector.load %arg8[%c0_17, %c0_18] : memref<128x128xf32, #tpu.memory_space<vmem>>, vector<128x128xf32>
    tpu.vector_store %arg8[%c0_17, %c0_18], %21 {strides = array<i32>} : memref<128x128xf32, #tpu.memory_space<vmem>>, vector<128x128xf32>,
    return
  }
  func.func @transform_0(%arg0: i32) -> (i32, i32) {
    %c0_i32 = arith.constant 0 : i32
    %c0_i32_0 = arith.constant 0 : i32
    return %arg0, %c0_i32 : i32, i32
  }
  func.func @transform_1(%arg0: i32) -> (i32, i32) {
    %c0_i32 = arith.constant 0 : i32
    %c0_i32_0 = arith.constant 0 : i32
    %c0_i32_1 = arith.constant 0 : i32
    return %c0_i32, %c0_i32_0 : i32, i32
  }
  func.func @transform_2(%arg0: i32) -> (i32, i32) {
    %c0_i32 = arith.constant 0 : i32
    %c0_i32_0 = arith.constant 0 : i32
    %c0_i32_1 = arith.constant 0 : i32
    return %c0_i32, %c0_i32_0 : i32, i32
  }
  func.func @transform_3(%arg0: i32) -> (i32, i32) {
    %c0_i32 = arith.constant 0 : i32
    %c0_i32_0 = arith.constant 0 : i32
    %c0_i32_1 = arith.constant 0 : i32
    return %c0_i32, %c0_i32_0 : i32, i32
  }
  func.func @transform_4(%arg0: i32) -> (i32, i32) {
    %c0_i32 = arith.constant 0 : i32
    %c0_i32_0 = arith.constant 0 : i32
    %c0_i32_1 = arith.constant 0 : i32
    return %c0_i32, %c0_i32_0 : i32, i32
  }
  func.func @transform_5(%arg0: i32) -> (i32, i32) {
    %c0_i32 = arith.constant 0 : i32
    %c0_i32_0 = arith.constant 0 : i32
    %c0_i32_1 = arith.constant 0 : i32
    return %c0_i32, %c0_i32_0 : i32, i32
  }
  func.func @transform_6(%arg0: i32) -> (i32, i32) {
    %c0_i32 = arith.constant 0 : i32
    %c0_i32_0 = arith.constant 0 : i32
    %c0_i32_1 = arith.constant 0 : i32
    return %c0_i32, %c0_i32_0 : i32, i32
  }
  func.func @transform_7(%arg0: i32) -> (i32, i32) {
    %c0_i32 = arith.constant 0 : i32
    %c0_i32_0 = arith.constant 0 : i32
    return %arg0, %c0_i32 : i32, i32
  }
}

</mosaic_0001>

<bundles_post_ra>
// kernel: qnetwork_forward.1
= control target key start
LH: loop header
LB: loop body
LE: loop exit
PB: predicated region body
PF: predicated region fallthrough
CT: control target
= control target key end

     0   :  { %vm94_vm0 = vcmask 1043456   ;;  %v930_v1 = vmov 0   ;;  %vm69_vm1 = vcmask 64512   ;;  %v54_v63 = vlaneseq  ;;  %s1245_s1 = inlined_call_operand.vmem [shape: bf16[8,256], index: 1, kind: input, shape index: {}]   ;;  %s1246_s0 = inlined_call_operand.vmem [shape: f32[128,8], index: 0, kind: input, shape index: {}]   ;;  %s1247_s3 = inlined_call_operand.vmem [shape: bf16[256,128], index: 3, kind: input, shape index: {}]   ;;  %s1248_s5 = inlined_call_operand.vmem [shape: f32[128,128], index: 5, kind: input, shape index: {}]   ;;  %s1249_s2 = inlined_call_operand.vmem [shape: f32[1,256], index: 2, kind: input, shape index: {}]   ;;  %s1250_s4 = inlined_call_operand.vmem [shape: f32[1,128], index: 4, kind: input, shape index: {}]   ;;  %s1251_s6 = inlined_call_operand.vmem [shape: f32[1,128], index: 6, kind: input, shape index: {}]   ;;  %s1252_s7 = inlined_call_operand.vmem [shape: f32[128,128], index: 7, kind: output, shape index: {}]  }
   0x1   :  { %v51_v0 = vld [vmem:[%s1245_s1] sm:$0xff]  ;;  %133 = vmatprep.mubr.bf16.mxu0 %v930_v1  ;;  %v28_v3 = vld [vmem:[%s1246_s0 + $0x8] sm:$0xff]  ;;  %v29_v8 = vld [vmem:[%s1246_s0 + $0x10] sm:$0xff] }
   0x2   :  { %v27_v2 = vld [vmem:[%s1246_s0] sm:$0xff]  ;;  %v699_v4 = vcombine.high %v51_v0, %v51_v0  ;;  %v698_v5 = vcombine.low %v51_v0, %v51_v0  ;;  %v30_v9 = vld [vmem:[%s1246_s0 + $0x18] sm:$0xff]  ;;  %v916_v12 = vld [vmem:[%s1247_s3 + $0x48] sm:$0xff]   ;;  %v55_v0 = vshrl.u32 %v54_v63, 7 }
   0x3   :  { %v43_v7 = vpack.c.bf16 %v28_v3, %v27_v2  ;;  %v914_v10 = vld [vmem:[%s1247_s3 + $0x40] sm:$0xff]   ;;  %v917_v13 = vld [vmem:[%s1247_s3 + $0x8] sm:$0xff]   ;;  %v918_v14 = vld [vmem:[%s1247_s3 + $0x50] sm:$0xff]   ;;  %v44_v15 = vpack.c.bf16 %v30_v9, %v29_v8 }
   0x4   :  { %700 = vmatprep.subr.msk.bf16.mxu0 %vm94_vm0, %v699_v4  ;;  %v96_v6 = vsel %vm94_vm0, %v698_v5, 0  ;;  %v915_v11 = vld [vmem:[%s1247_s3] sm:$0xff]   ;;  %727 = vmatprep.subr.bf16.mxu1 %v914_v10  ;;  %v919_v16 = vld [vmem:[%s1247_s3 + $0x10] sm:$0xff]   ;;  %v920_v18 = vld [vmem:[%s1247_s3 + $0x58] sm:$0xff]   ;;  %v60_v3 = vsub.s32 1, %v55_v0 }
   0x5   :  { %102 = vmatpush1.bf16.msra.mxu0 %v96_v6  ;;  %728 = vmatpush3.bf16.msra.mxu1 %v915_v11  ;;  %v31_v17 = vld [vmem:[%s1246_s0 + $0x20] sm:$0xff]  ;;  %v32_v19 = vld [vmem:[%s1246_s0 + $0x28] sm:$0xff]  ;;  %v921_v20 = vld [vmem:[%s1247_s3 + $0x18] sm:$0xff]  }
   0x6   :  { %729 = vmatprep.subr.bf16.mxu1 %v916_v12  ;;  %v922_v21 = vld [vmem:[%s1247_s3 + $0x60] sm:$0xff]   ;;  %v45_v22 = vpack.c.bf16 %v32_v19, %v31_v17  ;;  %v924_v24 = vld [vmem:[%s1247_s3 + $0x68] sm:$0xff]   ;;  %v33_v25 = vld [vmem:[%s1246_s0 + $0x30] sm:$0xff] }
   0x7   :  { %v923_v23 = vld [vmem:[%s1247_s3 + $0x20] sm:$0xff]   ;;  %v34_v26 = vld [vmem:[%s1246_s0 + $0x38] sm:$0xff]  ;;  %v36_v29 = vld [vmem:[%s1246_s0 + $0x48] sm:$0xff] }
   0x8   :  { %701 = vmatmul.mubr.msk.bf16.vlgmr.msra.gmra.mrb[0].mxu0 %vm69_vm1, %v43_v7  ;;  %v46_v27 = vpack.c.bf16 %v34_v26, %v33_v25  ;;  %v35_v28 = vld [vmem:[%s1246_s0 + $0x40] sm:$0xff]  ;;  %v37_v31 = vld [vmem:[%s1246_s0 + $0x50] sm:$0xff]  ;;  %v38_v32 = vld [vmem:[%s1246_s0 + $0x58] sm:$0xff] }
   0x9   :  { %143 = vmatprep.mubr.bf16.mxu0 %v930_v1  ;;  %730 = vmatpush3.bf16.msra.mxu1 %v917_v13  ;;  %v47_v30 = vpack.c.bf16 %v36_v29, %v35_v28  ;;  %v48_v33 = vpack.c.bf16 %v38_v32, %v37_v31  ;;  %v39_v34 = vld [vmem:[%s1246_s0 + $0x60] sm:$0xff]  ;;  %v40_v35 = vld [vmem:[%s1246_s0 + $0x68] sm:$0xff]  ;;  %v41_v37 = vld [vmem:[%s1246_s0 + $0x70] sm:$0xff] }
   0xa   :  { %731 = vmatprep.subr.bf16.mxu1 %v918_v14  ;;  %v49_v36 = vpack.c.bf16 %v40_v35, %v39_v34  ;;  %v42_v38 = vld [vmem:[%s1246_s0 + $0x78] sm:$0xff]  ;;  %v925_v40 = vld [vmem:[%s1247_s3 + $0x28] sm:$0xff]   ;;  %v926_v41 = vld [vmem:[%s1247_s3 + $0x70] sm:$0xff]  }
   0xb   :  { %v50_v39 = vpack.c.bf16 %v42_v38, %v41_v37  ;;  %v927_v42 = vld [vmem:[%s1247_s3 + $0x30] sm:$0xff]   ;;  %v928_v43 = vld [vmem:[%s1247_s3 + $0x78] sm:$0xff]   ;;  %v510_v45 = vld [vmem:[%s1248_s5] sm:$0xff] }
   0xc   :  { %v929_v44 = vld [vmem:[%s1247_s3 + $0x38] sm:$0xff]   ;;  %v511_v46 = vld [vmem:[%s1248_s5 + $0x8] sm:$0xff]  ;;  %v512_v47 = vld [vmem:[%s1248_s5 + $0x10] sm:$0xff] }
   0xd   :  { %732 = vmatpush3.bf16.msra.mxu1 %v919_v16  ;;  %v879_v48 = vpack.c.bf16 %v511_v46, %v510_v45  ;;  %v513_v49 = vld [vmem:[%s1248_s5 + $0x18] sm:$0xff]  ;;  %v514_v51 = vld [vmem:[%s1248_s5 + $0x20] sm:$0xff]  ;;  %v515_v52 = vld [vmem:[%s1248_s5 + $0x28] sm:$0xff] }
   0xe   :  { %733 = vmatprep.subr.bf16.mxu1 %v920_v18  ;;  %v883_v50 = vpack.c.bf16 %v513_v49, %v512_v47  ;;  %v887_v53 = vpack.c.bf16 %v515_v52, %v514_v51  ;;  %v516_v54 = vld [vmem:[%s1248_s5 + $0x30] sm:$0xff]  ;;  %v517_v55 = vld [vmem:[%s1248_s5 + $0x38] sm:$0xff]  ;;  %v518_v57 = vld [vmem:[%s1248_s5 + $0x40] sm:$0xff] }
   0xf   :  { %880 = vmatprep.subr.bf16.mxu0 %v879_v48  ;;  %v891_v56 = vpack.c.bf16 %v517_v55, %v516_v54  ;;  %v519_v58 = vld [vmem:[%s1248_s5 + $0x48] sm:$0xff]  ;;  %v520_v60 = vld [vmem:[%s1248_s5 + $0x50] sm:$0xff]  ;;  %v521_v61 = vld [vmem:[%s1248_s5 + $0x58] sm:$0xff] }
  0x10   :  { %702 = vmatmul.mubr.msk.bf16.gmra.mrb[4].mxu0 %vm69_vm1, %v44_v15  ;;  %v895_v59 = vpack.c.bf16 %v519_v58, %v518_v57  ;;  %v899_v62 = vpack.c.bf16 %v521_v61, %v520_v60  ;;  %v52_v2 = vld [vmem:[%s1249_s2] sm:$0x3] }
  0x11   :  { %153 = vmatprep.mubr.bf16.mxu0 %v930_v1  ;;  %734 = vmatpush3.bf16.msra.mxu1 %v921_v20  ;;  %v1127_v5 = vrot.slane %v52_v2, %v60_v3 }
  0x12   :  { %735 = vmatprep.subr.bf16.mxu1 %v922_v21  ;;  %882 = vmatpush3.bf16.msra.mxu0 %v879_v48 }
  0x13   :  { %884 = vmatprep.subr.bf16.mxu0 %v883_v50 }
  0x15   :  { %736 = vmatpush3.bf16.msra.mxu1 %v923_v23 }
  0x16   :  { %737 = vmatprep.subr.bf16.mxu1 %v924_v24  ;;  %886 = vmatpush3.bf16.msra.mxu0 %v883_v50 }
  0x17   :  { %888 = vmatprep.subr.bf16.mxu0 %v887_v53 }
  0x18   :  { %703 = vmatmul.mubr.msk.bf16.gmra.mrb[8].mxu0 %vm69_vm1, %v45_v22 }
  0x19   :  { %163 = vmatprep.mubr.bf16.mxu0 %v930_v1  ;;  %738 = vmatpush3.bf16.msra.mxu1 %v925_v40 }
  0x1a   :  { %739 = vmatprep.subr.bf16.mxu1 %v926_v41  ;;  %890 = vmatpush3.bf16.msra.mxu0 %v887_v53 }
  0x1b   :  { %892 = vmatprep.subr.bf16.mxu0 %v891_v56 }
  0x1d   :  { %740 = vmatpush3.bf16.msra.mxu1 %v927_v42 }
  0x1e   :  { %741 = vmatprep.subr.bf16.mxu1 %v928_v43  ;;  %894 = vmatpush3.bf16.msra.mxu0 %v891_v56 }
  0x1f   :  { %896 = vmatprep.subr.bf16.mxu0 %v895_v59 }
  0x20   :  { %704 = vmatmul.mubr.msk.bf16.gmra.mrb[12].mxu0 %vm69_vm1, %v46_v27 }
  0x21   :  { %173 = vmatprep.mubr.bf16.mxu0 %v930_v1  ;;  %742 = vmatpush3.bf16.msra.mxu1 %v929_v44 }
  0x22   :  { %898 = vmatpush3.bf16.msra.mxu0 %v895_v59 }
  0x23   :  { %900 = vmatprep.subr.bf16.mxu0 %v899_v62 }
  0x26   :  { %902 = vmatpush3.bf16.msra.mxu0 %v899_v62 }
  0x28   :  { %705 = vmatmul.mubr.msk.bf16.gmra.mrb[16].mxu0 %vm69_vm1, %v47_v30 }
  0x29   :  { %183 = vmatprep.mubr.bf16.mxu0 %v930_v1 }
  0x30   :  { %706 = vmatmul.mubr.msk.bf16.gmra.mrb[20].mxu0 %vm69_vm1, %v48_v33 }
  0x31   :  { %193 = vmatprep.mubr.bf16.mxu0 %v930_v1 }
  0x38   :  { %707 = vmatmul.mubr.msk.bf16.gmra.mrb[24].mxu0 %vm69_vm1, %v49_v36 }
  0x39   :  { %203 = vmatprep.mubr.bf16.mxu0 %v930_v1  ;;  %v56_v1 = vsub.s32 0, %v55_v0 }
  0x3b   :  { %v1125_v4 = vrot.slane %v52_v2, %v56_v1 }
  0x40   :  { %708 = vmatmul.mubr.msk.bf16.gmra.mrb[28].mxu0 %vm69_vm1, %v50_v39 }
  0xdb   :  { %v135_v6 = vpop.f32.mrb[0].mxu0 }
  0xdc   :  { %v136_v7 = vadd.f32 %v135_v6, %v1125_v4  ;;  %v137_v8 = vpop.f32.mrb[1].mxu0 }
  0xdd   :  { %v138_v9 = vadd.f32 %v137_v8, %v1127_v5  ;;  %v139_v10 = vpop.f32.mrb[2].mxu0 }
  0xde   :  { %v140_v11 = vadd.f32 %v139_v10, %v1125_v4  ;;  %v141_v12 = vpop.f32.mrb[3].mxu0  ;;  %v214_v14 = vmax.f32 %v136_v7, 0.0 }
  0xdf   :  { %v142_v13 = vadd.f32 %v141_v12, %v1127_v5  ;;  %v215_v16 = vmax.f32 %v138_v9, 0.0 }
  0xe0   :  { %v216_v15 = vmax.f32 %v140_v11, 0.0 }
  0xe1   :  { %v217_v17 = vmax.f32 %v142_v13, 0.0 }
  0xe2   :  { %v246_v18 = vpack.c.bf16 %v216_v15, %v214_v14 }
  0xe3   :  { %v145_v19 = vpop.f32.mrb[4].mxu0  ;;  %v247_v20 = vpack.c.bf16 %v217_v17, %v215_v16 }
  0xe4   :  { %v146_v21 = vadd.f32 %v145_v19, %v1125_v4  ;;  %v147_v22 = vpop.f32.mrb[5].mxu0 }
  0xe5   :  { %v148_v23 = vadd.f32 %v147_v22, %v1127_v5  ;;  %v149_v24 = vpop.f32.mrb[6].mxu0  ;;  %429 = vmatprep.mubr.bf16.mxu1 %v247_v20 }
  0xe6   :  { %v150_v25 = vadd.f32 %v149_v24, %v1125_v4  ;;  %v151_v26 = vpop.f32.mrb[7].mxu0  ;;  %430 = vmatmul.mubr.bf16.vlgmr.msra.gmra.mrb[0].mxu1 %v246_v18  ;;  %v218_v28 = vmax.f32 %v146_v21, 0.0 }
  0xe7   :  { %v152_v27 = vadd.f32 %v151_v26, %v1127_v5  ;;  %v219_v30 = vmax.f32 %v148_v23, 0.0 }
  0xe8   :  { %v220_v29 = vmax.f32 %v150_v25, 0.0 }
  0xe9   :  { %v221_v31 = vmax.f32 %v152_v27, 0.0 }
  0xea   :  { %v248_v32 = vpack.c.bf16 %v220_v29, %v218_v28 }
  0xeb   :  { %v249_v33 = vpack.c.bf16 %v221_v31, %v219_v30  ;;  %v155_v34 = vpop.f32.mrb[8].mxu0 }
  0xec   :  { %v156_v35 = vadd.f32 %v155_v34, %v1125_v4  ;;  %v157_v36 = vpop.f32.mrb[9].mxu0 }
  0xed   :  { %v158_v37 = vadd.f32 %v157_v36, %v1127_v5  ;;  %v159_v38 = vpop.f32.mrb[10].mxu0  ;;  %437 = vmatprep.mubr.bf16.mxu1 %v249_v33 }
  0xee   :  { %v160_v39 = vadd.f32 %v159_v38, %v1125_v4  ;;  %v161_v40 = vpop.f32.mrb[11].mxu0  ;;  %438 = vmatmul.mubr.bf16.gmra.mrb[4].mxu1 %v248_v32  ;;  %v222_v42 = vmax.f32 %v156_v35, 0.0 }
  0xef   :  { %v162_v41 = vadd.f32 %v161_v40, %v1127_v5  ;;  %v223_v44 = vmax.f32 %v158_v37, 0.0 }
  0xf0   :  { %v224_v43 = vmax.f32 %v160_v39, 0.0 }
  0xf1   :  { %v225_v45 = vmax.f32 %v162_v41, 0.0 }
  0xf2   :  { %v250_v46 = vpack.c.bf16 %v224_v43, %v222_v42 }
  0xf3   :  { %v251_v47 = vpack.c.bf16 %v225_v45, %v223_v44  ;;  %v165_v48 = vpop.f32.mrb[12].mxu0 }
  0xf4   :  { %v166_v49 = vadd.f32 %v165_v48, %v1125_v4  ;;  %v167_v50 = vpop.f32.mrb[13].mxu0 }
  0xf5   :  { %v168_v51 = vadd.f32 %v167_v50, %v1127_v5  ;;  %v169_v52 = vpop.f32.mrb[14].mxu0  ;;  %445 = vmatprep.mubr.bf16.mxu1 %v251_v47 }
  0xf6   :  { %v170_v53 = vadd.f32 %v169_v52, %v1125_v4  ;;  %v171_v54 = vpop.f32.mrb[15].mxu0  ;;  %446 = vmatmul.mubr.bf16.gmra.mrb[8].mxu1 %v250_v46  ;;  %v226_v56 = vmax.f32 %v166_v49, 0.0 }
  0xf7   :  { %v172_v55 = vadd.f32 %v171_v54, %v1127_v5  ;;  %v227_v58 = vmax.f32 %v168_v51, 0.0 }
  0xf8   :  { %v228_v57 = vmax.f32 %v170_v53, 0.0 }
  0xf9   :  { %v229_v59 = vmax.f32 %v172_v55, 0.0 }
  0xfa   :  { %v252_v60 = vpack.c.bf16 %v228_v57, %v226_v56  ;;  %v522_v56 = vld [vmem:[%s1248_s5 + $0x60] sm:$0xff] }
  0xfb   :  { %v253_v61 = vpack.c.bf16 %v229_v59, %v227_v58  ;;  %v175_v62 = vpop.f32.mrb[16].mxu0  ;;  %v525_v58 = vld [vmem:[%s1248_s5 + $0x78] sm:$0xff] }
  0xfc   :  { %v176_v63 = vadd.f32 %v175_v62, %v1125_v4  ;;  %v177_v0 = vpop.f32.mrb[17].mxu0 }
  0xfd   :  { %v178_v1 = vadd.f32 %v177_v0, %v1127_v5  ;;  %v179_v2 = vpop.f32.mrb[18].mxu0  ;;  %453 = vmatprep.mubr.bf16.mxu1 %v253_v61  ;;  %v1176_v61 = vld [vmem:[%s1250_s4] ss:$0 sm:$0xff] }
  0xfe   :  { %v180_v3 = vadd.f32 %v179_v2, %v1125_v4  ;;  %v181_v6 = vpop.f32.mrb[19].mxu0  ;;  %454 = vmatmul.mubr.bf16.gmra.mrb[12].mxu1 %v252_v60  ;;  %v230_v8 = vmax.f32 %v176_v63, 0.0 }
  0xff   :  { %v182_v7 = vadd.f32 %v181_v6, %v1127_v5  ;;  %v231_v10 = vmax.f32 %v178_v1, 0.0 }
 0x100   :  { %v232_v9 = vmax.f32 %v180_v3, 0.0 }
 0x101   :  { %v233_v11 = vmax.f32 %v182_v7, 0.0 }
 0x102   :  { %v254_v12 = vpack.c.bf16 %v232_v9, %v230_v8 }
 0x103   :  { %v255_v13 = vpack.c.bf16 %v233_v11, %v231_v10  ;;  %v185_v14 = vpop.f32.mrb[20].mxu0 }
 0x104   :  { %v186_v15 = vadd.f32 %v185_v14, %v1125_v4  ;;  %v187_v16 = vpop.f32.mrb[21].mxu0 }
 0x105   :  { %v188_v17 = vadd.f32 %v187_v16, %v1127_v5  ;;  %v189_v18 = vpop.f32.mrb[22].mxu0  ;;  %461 = vmatprep.mubr.bf16.mxu1 %v255_v13 }
 0x106   :  { %v190_v19 = vadd.f32 %v189_v18, %v1125_v4  ;;  %v191_v20 = vpop.f32.mrb[23].mxu0  ;;  %462 = vmatmul.mubr.bf16.gmra.mrb[16].mxu1 %v254_v12  ;;  %v234_v22 = vmax.f32 %v186_v15, 0.0 }
 0x107   :  { %v192_v21 = vadd.f32 %v191_v20, %v1127_v5  ;;  %v235_v24 = vmax.f32 %v188_v17, 0.0 }
 0x108   :  { %v236_v23 = vmax.f32 %v190_v19, 0.0 }
 0x109   :  { %v237_v25 = vmax.f32 %v192_v21, 0.0 }
 0x10a   :  { %v256_v26 = vpack.c.bf16 %v236_v23, %v234_v22 }
 0x10b   :  { %v257_v27 = vpack.c.bf16 %v237_v25, %v235_v24  ;;  %v195_v28 = vpop.f32.mrb[24].mxu0 }
 0x10c   :  { %v196_v29 = vadd.f32 %v195_v28, %v1125_v4  ;;  %v197_v30 = vpop.f32.mrb[25].mxu0 }
 0x10d   :  { %v198_v31 = vadd.f32 %v197_v30, %v1127_v5  ;;  %v199_v32 = vpop.f32.mrb[26].mxu0  ;;  %469 = vmatprep.mubr.bf16.mxu1 %v257_v27 }
 0x10e   :  { %v200_v33 = vadd.f32 %v199_v32, %v1125_v4  ;;  %v201_v34 = vpop.f32.mrb[27].mxu0  ;;  %470 = vmatmul.mubr.bf16.gmra.mrb[20].mxu1 %v256_v26  ;;  %v238_v36 = vmax.f32 %v196_v29, 0.0 }
 0x10f   :  { %v202_v35 = vadd.f32 %v201_v34, %v1127_v5  ;;  %v239_v38 = vmax.f32 %v198_v31, 0.0 }
 0x110   :  { %v240_v37 = vmax.f32 %v200_v33, 0.0 }
 0x111   :  { %v241_v39 = vmax.f32 %v202_v35, 0.0 }
 0x112   :  { %v258_v40 = vpack.c.bf16 %v240_v37, %v238_v36 }
 0x113   :  { %v259_v41 = vpack.c.bf16 %v241_v39, %v239_v38  ;;  %v205_v42 = vpop.f32.mrb[28].mxu0 }
 0x114   :  { %v206_v43 = vadd.f32 %v205_v42, %v1125_v4  ;;  %v207_v44 = vpop.f32.mrb[29].mxu0 }
 0x115   :  { %v208_v45 = vadd.f32 %v207_v44, %v1127_v5  ;;  %v209_v46 = vpop.f32.mrb[30].mxu0  ;;  %477 = vmatprep.mubr.bf16.mxu1 %v259_v41 }
 0x116   :  { %v210_v47 = vadd.f32 %v209_v46, %v1125_v4  ;;  %v211_v48 = vpop.f32.mrb[31].mxu0  ;;  %478 = vmatmul.mubr.bf16.gmra.mrb[24].mxu1 %v258_v40  ;;  %v242_v50 = vmax.f32 %v206_v43, 0.0  ;;  %v523_v4 = vld [vmem:[%s1248_s5 + $0x68] sm:$0xff] }
 0x117   :  { %v212_v49 = vadd.f32 %v211_v48, %v1127_v5  ;;  %v243_v52 = vmax.f32 %v208_v45, 0.0  ;;  %v903_v57 = vpack.c.bf16 %v523_v4, %v522_v56  ;;  %v524_v5 = vld [vmem:[%s1248_s5 + $0x70] sm:$0xff] }
 0x118   :  { %v244_v51 = vmax.f32 %v210_v47, 0.0  ;;  %v907_v59 = vpack.c.bf16 %v525_v58, %v524_v5 }
 0x119   :  { %v245_v53 = vmax.f32 %v212_v49, 0.0  ;;  %904 = vmatprep.subr.bf16.mxu0 %v903_v57 }
 0x11a   :  { %v260_v54 = vpack.c.bf16 %v244_v51, %v242_v50  ;;  %906 = vmatpush3.bf16.msra.mxu0 %v903_v57 }
 0x11b   :  { %v261_v55 = vpack.c.bf16 %v245_v53, %v243_v52  ;;  %908 = vmatprep.subr.bf16.mxu0 %v907_v59 }
 0x11d   :  { %485 = vmatprep.mubr.bf16.mxu1 %v261_v55 }
 0x11e   :  { %486 = vmatmul.mubr.bf16.gmra.mrb[28].mxu1 %v260_v54  ;;  %910 = vmatpush3.bf16.msra.mxu0 %v907_v59 }
 0x1b9   :  { %v743_v60 = vpop.f32.mrb[0].mxu1 }
 0x1ba   :  { %v744_v62 = vpop.f32.mrb[1].mxu1 }
 0x1bb   :  { %v745_v63 = vadd.f32 %v744_v62, %v743_v60  ;;  %v746_v0 = vpop.f32.mrb[2].mxu1 }
 0x1bc   :  { %v747_v1 = vpop.f32.mrb[3].mxu1 }
 0x1bd   :  { %v432_v2 = vadd.f32 %v745_v63, %v1176_v61  ;;  %v748_v3 = vadd.f32 %v747_v1, %v746_v0 }
 0x1bf   :  { %v494_v6 = vmax.f32 %v432_v2, 0.0  ;;  %v435_v7 = vadd.f32 %v748_v3, %v1176_v61 }
 0x1c1   :  { %v495_v8 = vmax.f32 %v435_v7, 0.0  ;;  %v749_v9 = vpop.f32.mrb[4].mxu1  ;;  %855 = vmatprep.mubr.f32.mxu0 %v494_v6 }
 0x1c2   :  { %v750_v10 = vpop.f32.mrb[5].mxu1 }
 0x1c3   :  { %v751_v11 = vadd.f32 %v750_v10, %v749_v9  ;;  %v752_v12 = vpop.f32.mrb[6].mxu1  ;;  %856 = vmatmul.mubr.f32.vlgmr.msra.gmra.mrb[32].mxu0 %v495_v8 }
 0x1c4   :  { %v753_v13 = vpop.f32.mrb[7].mxu1 }
 0x1c5   :  { %v440_v14 = vadd.f32 %v751_v11, %v1176_v61  ;;  %v754_v15 = vadd.f32 %v753_v13, %v752_v12 }
 0x1c7   :  { %v496_v16 = vmax.f32 %v440_v14, 0.0  ;;  %v443_v17 = vadd.f32 %v754_v15, %v1176_v61 }
 0x1c9   :  { %v497_v18 = vmax.f32 %v443_v17, 0.0  ;;  %v755_v19 = vpop.f32.mrb[8].mxu1  ;;  %858 = vmatprep.mubr.f32.mxu0 %v496_v16  ;;  %v726_v16 = vld [vmem:[%s1251_s6] ss:$0 sm:$0xff] }
 0x1ca   :  { %v756_v20 = vpop.f32.mrb[9].mxu1 }
 0x1cb   :  { %v757_v21 = vadd.f32 %v756_v20, %v755_v19  ;;  %v758_v22 = vpop.f32.mrb[10].mxu1  ;;  %859 = vmatmul.mubr.f32.gmra.mrb[34].mxu0 %v497_v18 }
 0x1cc   :  { %v759_v23 = vpop.f32.mrb[11].mxu1 }
 0x1cd   :  { %v448_v24 = vadd.f32 %v757_v21, %v1176_v61  ;;  %v760_v25 = vadd.f32 %v759_v23, %v758_v22 }
 0x1cf   :  { %v498_v26 = vmax.f32 %v448_v24, 0.0  ;;  %v451_v27 = vadd.f32 %v760_v25, %v1176_v61 }
 0x1d1   :  { %v499_v28 = vmax.f32 %v451_v27, 0.0  ;;  %v761_v29 = vpop.f32.mrb[12].mxu1  ;;  %861 = vmatprep.mubr.f32.mxu0 %v498_v26 }
 0x1d2   :  { %v762_v30 = vpop.f32.mrb[13].mxu1 }
 0x1d3   :  { %v763_v31 = vadd.f32 %v762_v30, %v761_v29  ;;  %v764_v32 = vpop.f32.mrb[14].mxu1  ;;  %862 = vmatmul.mubr.f32.gmra.mrb[36].mxu0 %v499_v28 }
 0x1d4   :  { %v765_v33 = vpop.f32.mrb[15].mxu1 }
 0x1d5   :  { %v456_v34 = vadd.f32 %v763_v31, %v1176_v61  ;;  %v766_v35 = vadd.f32 %v765_v33, %v764_v32 }
 0x1d7   :  { %v500_v36 = vmax.f32 %v456_v34, 0.0  ;;  %v459_v37 = vadd.f32 %v766_v35, %v1176_v61 }
 0x1d9   :  { %v501_v38 = vmax.f32 %v459_v37, 0.0  ;;  %v767_v39 = vpop.f32.mrb[16].mxu1  ;;  %864 = vmatprep.mubr.f32.mxu0 %v500_v36 }
 0x1da   :  { %v768_v40 = vpop.f32.mrb[17].mxu1 }
 0x1db   :  { %v769_v41 = vadd.f32 %v768_v40, %v767_v39  ;;  %v770_v42 = vpop.f32.mrb[18].mxu1  ;;  %865 = vmatmul.mubr.f32.gmra.mrb[38].mxu0 %v501_v38 }
 0x1dc   :  { %v771_v43 = vpop.f32.mrb[19].mxu1 }
 0x1dd   :  { %v464_v44 = vadd.f32 %v769_v41, %v1176_v61  ;;  %v772_v45 = vadd.f32 %v771_v43, %v770_v42 }
 0x1df   :  { %v502_v46 = vmax.f32 %v464_v44, 0.0  ;;  %v467_v47 = vadd.f32 %v772_v45, %v1176_v61 }
 0x1e1   :  { %v503_v48 = vmax.f32 %v467_v47, 0.0  ;;  %v773_v49 = vpop.f32.mrb[20].mxu1  ;;  %867 = vmatprep.mubr.f32.mxu0 %v502_v46 }
 0x1e2   :  { %v774_v50 = vpop.f32.mrb[21].mxu1 }
 0x1e3   :  { %v775_v51 = vadd.f32 %v774_v50, %v773_v49  ;;  %v776_v52 = vpop.f32.mrb[22].mxu1  ;;  %868 = vmatmul.mubr.f32.gmra.mrb[40].mxu0 %v503_v48 }
 0x1e4   :  { %v777_v53 = vpop.f32.mrb[23].mxu1 }
 0x1e5   :  { %v472_v54 = vadd.f32 %v775_v51, %v1176_v61  ;;  %v778_v55 = vadd.f32 %v777_v53, %v776_v52 }
 0x1e7   :  { %v504_v56 = vmax.f32 %v472_v54, 0.0  ;;  %v475_v4 = vadd.f32 %v778_v55, %v1176_v61 }
 0x1e9   :  { %v505_v57 = vmax.f32 %v475_v4, 0.0  ;;  %v779_v5 = vpop.f32.mrb[24].mxu1  ;;  %870 = vmatprep.mubr.f32.mxu0 %v504_v56 }
 0x1ea   :  { %v780_v58 = vpop.f32.mrb[25].mxu1 }
 0x1eb   :  { %v781_v59 = vadd.f32 %v780_v58, %v779_v5  ;;  %v782_v60 = vpop.f32.mrb[26].mxu1  ;;  %871 = vmatmul.mubr.f32.gmra.mrb[42].mxu0 %v505_v57 }
 0x1ec   :  { %v783_v62 = vpop.f32.mrb[27].mxu1 }
 0x1ed   :  { %v480_v63 = vadd.f32 %v781_v59, %v1176_v61  ;;  %v784_v0 = vadd.f32 %v783_v62, %v782_v60 }
 0x1ef   :  { %v506_v1 = vmax.f32 %v480_v63, 0.0  ;;  %v483_v2 = vadd.f32 %v784_v0, %v1176_v61 }
 0x1f1   :  { %v507_v3 = vmax.f32 %v483_v2, 0.0  ;;  %v785_v6 = vpop.f32.mrb[28].mxu1  ;;  %873 = vmatprep.mubr.f32.mxu0 %v506_v1 }
 0x1f2   :  { %v786_v7 = vpop.f32.mrb[29].mxu1 }
 0x1f3   :  { %v787_v8 = vadd.f32 %v786_v7, %v785_v6  ;;  %v788_v9 = vpop.f32.mrb[30].mxu1  ;;  %874 = vmatmul.mubr.f32.gmra.mrb[44].mxu0 %v507_v3 }
 0x1f4   :  { %v789_v10 = vpop.f32.mrb[31].mxu1 }
 0x1f5   :  { %v488_v11 = vadd.f32 %v787_v8, %v1176_v61  ;;  %v790_v12 = vadd.f32 %v789_v10, %v788_v9 }
 0x1f7   :  { %v508_v13 = vmax.f32 %v488_v11, 0.0  ;;  %v491_v14 = vadd.f32 %v790_v12, %v1176_v61 }
 0x1f9   :  { %v509_v15 = vmax.f32 %v491_v14, 0.0  ;;  %876 = vmatprep.mubr.f32.mxu0 %v508_v13 }
 0x1fb   :  { %877 = vmatmul.mubr.f32.gmra.mrb[46].mxu0 %v509_v15 }
 0x296   :  { %v857_v17 = vpop.f32.mrb[32].mxu0 }
 0x297   :  { %v605_v18 = vadd.f32 %v857_v17, %v726_v16  ;;  %v599_v19 = vpop.f32.mrb[33].mxu0 }
 0x298   :  { %v600_v20 = vadd.f32 %v726_v16, %v599_v19 }
 0x299   :  { %679 = vst [vmem:[%s1252_s7 + $0x8] sm:$0xff] %v605_v18 }
 0x29a   :  { %678 = vst [vmem:[%s1252_s7] sm:$0xff] %v600_v20 }
 0x29e   :  { %v860_v61 = vpop.f32.mrb[34].mxu0 }
 0x29f   :  { %v615_v21 = vadd.f32 %v860_v61, %v726_v16  ;;  %v609_v22 = vpop.f32.mrb[35].mxu0 }
 0x2a0   :  { %v610_v23 = vadd.f32 %v726_v16, %v609_v22 }
 0x2a1   :  { %681 = vst [vmem:[%s1252_s7 + $0x18] sm:$0xff] %v615_v21 }
 0x2a2   :  { %680 = vst [vmem:[%s1252_s7 + $0x10] sm:$0xff] %v610_v23 }
 0x2a6   :  { %v863_v24 = vpop.f32.mrb[36].mxu0 }
 0x2a7   :  { %v625_v25 = vadd.f32 %v863_v24, %v726_v16  ;;  %v619_v26 = vpop.f32.mrb[37].mxu0 }
 0x2a8   :  { %v620_v27 = vadd.f32 %v726_v16, %v619_v26 }
 0x2a9   :  { %683 = vst [vmem:[%s1252_s7 + $0x28] sm:$0xff] %v625_v25 }
 0x2aa   :  { %682 = vst [vmem:[%s1252_s7 + $0x20] sm:$0xff] %v620_v27 }
 0x2ae   :  { %v866_v28 = vpop.f32.mrb[38].mxu0 }
 0x2af   :  { %v635_v29 = vadd.f32 %v866_v28, %v726_v16  ;;  %v629_v30 = vpop.f32.mrb[39].mxu0 }
 0x2b0   :  { %v630_v31 = vadd.f32 %v726_v16, %v629_v30 }
 0x2b1   :  { %685 = vst [vmem:[%s1252_s7 + $0x38] sm:$0xff] %v635_v29 }
 0x2b2   :  { %684 = vst [vmem:[%s1252_s7 + $0x30] sm:$0xff] %v630_v31 }
 0x2b6   :  { %v869_v32 = vpop.f32.mrb[40].mxu0 }
 0x2b7   :  { %v645_v33 = vadd.f32 %v869_v32, %v726_v16  ;;  %v639_v34 = vpop.f32.mrb[41].mxu0 }
 0x2b8   :  { %v640_v35 = vadd.f32 %v726_v16, %v639_v34 }
 0x2b9   :  { %687 = vst [vmem:[%s1252_s7 + $0x48] sm:$0xff] %v645_v33 }
 0x2ba   :  { %686 = vst [vmem:[%s1252_s7 + $0x40] sm:$0xff] %v640_v35 }
 0x2be   :  { %v872_v36 = vpop.f32.mrb[42].mxu0 }
 0x2bf   :  { %v655_v37 = vadd.f32 %v872_v36, %v726_v16  ;;  %v649_v38 = vpop.f32.mrb[43].mxu0 }
 0x2c0   :  { %v650_v39 = vadd.f32 %v726_v16, %v649_v38 }
 0x2c1   :  { %689 = vst [vmem:[%s1252_s7 + $0x58] sm:$0xff] %v655_v37 }
 0x2c2   :  { %688 = vst [vmem:[%s1252_s7 + $0x50] sm:$0xff] %v650_v39 }
 0x2c6   :  { %v875_v40 = vpop.f32.mrb[44].mxu0 }
 0x2c7   :  { %v665_v41 = vadd.f32 %v875_v40, %v726_v16  ;;  %v659_v42 = vpop.f32.mrb[45].mxu0 }
 0x2c8   :  { %v660_v43 = vadd.f32 %v726_v16, %v659_v42 }
 0x2c9   :  { %691 = vst [vmem:[%s1252_s7 + $0x68] sm:$0xff] %v665_v41 }
 0x2ca   :  { %690 = vst [vmem:[%s1252_s7 + $0x60] sm:$0xff] %v660_v43 }
 0x2ce   :  { %v878_v44 = vpop.f32.mrb[46].mxu0 }
 0x2cf   :  { %v675_v45 = vadd.f32 %v878_v44, %v726_v16  ;;  %v669_v46 = vpop.f32.mrb[47].mxu0 }
 0x2d0   :  { %v670_v47 = vadd.f32 %v726_v16, %v669_v46 }
 0x2d1   :  { %693 = vst [vmem:[%s1252_s7 + $0x78] sm:$0xff] %v675_v45 }
 0x2d2   :  { %692 = vst [vmem:[%s1252_s7 + $0x70] sm:$0xff] %v670_v47 }

</bundles_post_ra>
